<compile_context>
chip_gen: v5e
topology: v5e:2x2
jax: 0.10.0
libtpu: 0.0.40
codegen_flags: <defaults>
</compile_context>

<pallas_src>
import jax
import jax.numpy as jnp
from jax.experimental import pallas as pl
from jax.experimental.pallas import tpu as pltpu


def _re_head_kernel(
    eidx_ref,   # SMEM (B, 4) int32   -- scalar-prefetched entity indices
    x_ref,      # VMEM (TB, S, H) bf16 -- TB batch rows of last_hidden_state
    wf_ref,     # VMEM (3H, Lp) f32    -- fused classifier weight
    bf_ref,     # VMEM (1, Lp) f32     -- fused classifier bias
    out_ref,    # VMEM (TB, Lp) f32
):
    TB, S, H = x_ref.shape
    b0 = pl.program_id(0) * TB

    # Per-row selection masks:
    #   row 0 -> CLS token (one-hot mean == x[b, 0]),
    #   row 1 -> subject span [s0, s1), row 2 -> object span [o0, o1).
    row = jax.lax.broadcasted_iota(jnp.int32, (3, S), 0)
    pos = jax.lax.broadcasted_iota(jnp.int32, (3, S), 1)

    masks = []
    for t in range(TB):  # static unroll; TB is small
        s0 = eidx_ref[b0 + t, 0]
        s1 = eidx_ref[b0 + t, 1]
        o0 = eidx_ref[b0 + t, 2]
        o1 = eidx_ref[b0 + t, 3]
        start = jnp.where(row == 1, s0, jnp.where(row == 2, o0, 0))
        end = jnp.where(row == 1, s1, jnp.where(row == 2, o1, 1))
        masks.append(((pos >= start) & (pos < end)).astype(jnp.float32))
    mask = jnp.stack(masks, axis=0)                      # (TB, 3, S) f32

    # Guard degenerate (empty / reversed) spans against div-by-zero; identical
    # to the reference for all valid spans.  Fold 1/cnt into the mask rows
    # (EUP reciprocal, off the per-H vector path) before the MXU dot.
    cnt = jnp.maximum(jnp.sum(mask, axis=2, keepdims=True), 1.0)
    maskn = (mask * pl.reciprocal(cnt, approx=True)).astype(x_ref.dtype)

    # Batched (3,S)@(S,H) on the MXU: [cls; subj_mean; obj_mean] per row,
    # bf16 x bf16 with f32 accumulation.
    feats = jnp.einsum('bks,bsh->bkh', maskn, x_ref[...],
                       preferred_element_type=jnp.float32)   # (TB, 3, H)
    act = jnp.tanh(feats).astype(wf_ref.dtype)

    # Folded affine tail: three static Ref-view slices of the fused weight
    # (no lane-axis concatenate, no act reshape); accumulate in f32.
    acc = jnp.dot(act[:, 0, :], wf_ref[0:H], preferred_element_type=jnp.float32)
    acc = acc + jnp.dot(act[:, 1, :], wf_ref[H:2 * H],
                        preferred_element_type=jnp.float32)
    acc = acc + jnp.dot(act[:, 2, :], wf_ref[2 * H:3 * H],
                        preferred_element_type=jnp.float32)
    out_ref[...] = acc + bf_ref[...]


def fold_classifier_params(params, *, lanes=128, weight_dtype=jnp.float32):
    """Fold branch Linears -> dense1 -> dense2 -> out_proj into one affine map.

    Exact in real arithmetic (dropout = identity / eval mode; the PyTorch
    entity_classifier has no nonlinearity between its Linears).  Returns
    (W_fused (3H, Lp), b_fused (1, Lp)) with the label dim zero-padded to a
    full 128-lane multiple.  Call ONCE at load time (hoisted per perf review).
    """
    H = params["w_cls"].shape[0]
    L = params["w_out"].shape[1]
    Lp = ((L + lanes - 1) // lanes) * lanes

    w_tail = params["w_d2"] @ params["w_out"]                        # (H, L)
    wf = jnp.concatenate(
        [params["w_cls"] @ params["w_d1"][:H],
         params["w_e1"] @ params["w_d1"][H:2 * H],
         params["w_e2"] @ params["w_d1"][2 * H:]], axis=0) @ w_tail  # (3H, L)

    b1 = (params["b_cls"][0] @ params["w_d1"][:H]
          + params["b_e1"][0] @ params["w_d1"][H:2 * H]
          + params["b_e2"][0] @ params["w_d1"][2 * H:]
          + params["b_d1"][0])                                        # (H,)
    bf = (b1 @ params["w_d2"] + params["b_d2"][0]) @ params["w_out"] + params["b_out"][0]

    wf = jnp.pad(wf, ((0, 0), (0, Lp - L))).astype(weight_dtype)
    bf = jnp.pad(bf, (0, Lp - L)).astype(jnp.float32).reshape(1, Lp)
    return wf, bf


def _pick_tb(B, max_tb=8):
    """Batch rows per grid step: TB == B, or a multiple of 8 dividing B (so the
    (TB, Lp) output block satisfies the (8,128) constraint)."""
    if B <= max_tb:
        return B
    tb = (max_tb // 8) * 8
    while tb >= 8:
        if B % tb == 0:
            return tb
        tb -= 8
    return B  # fallback: whole batch in one block


def re_model_head(x, entity_idx, wf, bf, num_labels, *,
                  max_tb=8, x_dtype=jnp.bfloat16):
    """x: (B, S, H), entity_idx: (B, 4) i32, wf/bf: pre-folded classifier."""
    B, S, H = x.shape
    Lp = wf.shape[1]
    assert wf.shape[0] == 3 * H and Lp % 128 == 0

    TB = _pick_tb(B, max_tb)
    x = x.astype(x_dtype)                       # halve HBM traffic on the slab
    entity_idx = entity_idx.astype(jnp.int32)

    # VMEM budget from the actual (double-buffered) block sizes; cap for the
    # 64 MiB v7x part.  bf16 x keeps TB<=8 well under budget on every gen.
    x_blk = TB * S * H * jnp.dtype(x_dtype).itemsize
    resident = 3 * H * Lp * wf.dtype.itemsize + Lp * 4 + TB * Lp * 4
    vmem_limit = min(max(2 * (x_blk + resident) + (4 << 20), 8 << 20), 64 << 20)

    grid_spec = pltpu.PrefetchScalarGridSpec(
        num_scalar_prefetch=1,                  # entity_idx -> SMEM
        grid=(B // TB,),
        in_specs=[
            # TODO(synk): pipeline_mode=pl.Buffered(3) on this spec is a small
            # further win on v7x once per-step bytes are tiny.
            pl.BlockSpec((TB, S, H), lambda g, eidx: (g, 0, 0)),
            pl.BlockSpec((3 * H, Lp), lambda g, eidx: (0, 0)),
            pl.BlockSpec((1, Lp), lambda g, eidx: (0, 0)),
        ],
        out_specs=pl.BlockSpec((TB, Lp), lambda g, eidx: (g, 0)),
    )

    out = pl.pallas_call(
        _re_head_kernel,
        grid_spec=grid_spec,
        out_shape=jax.ShapeDtypeStruct((B, Lp), jnp.float32),
        compiler_params=pltpu.CompilerParams(
            dimension_semantics=("parallel",),   # split batch axis across TCs
            vmem_limit_bytes=int(vmem_limit)),
    )(entity_idx, x, wf, bf)

    return out[:, :num_labels]


def re_model_head_ref(x, entity_idx, params):
    """Pure-JAX reference matching the PyTorch forward (eval mode, unfused f32)."""
    B = x.shape[0]
    subj, obj = [], []
    for b in range(B):
        s0, s1, o0, o1 = (int(entity_idx[b, i]) for i in range(4))
        subj.append(jnp.mean(x[b, s0:s1, :], axis=0))
        obj.append(jnp.mean(x[b, o0:o1, :], axis=0))
    subj = jnp.stack(subj)
    obj = jnp.stack(obj)
    x0 = x[:, 0, :]
    h_cls = jnp.tanh(x0) @ params["w_cls"] + params["b_cls"][0]
    h_e1 = jnp.tanh(subj) @ params["w_e1"] + params["b_e1"][0]
    h_e2 = jnp.tanh(obj) @ params["w_e2"] + params["b_e2"][0]
    cat = jnp.concatenate([h_cls, h_e1, h_e2], axis=1)
    h = cat @ params["w_d1"] + params["b_d1"][0]
    h = h @ params["w_d2"] + params["b_d2"][0]
    return h @ params["w_out"] + params["b_out"][0]


def init_params(key, hidden, num_labels):
    """Deterministic synthetic parameters. Weights stored as (in, out)."""
    ks = jax.random.split(key, 12)
    s = 0.02
    return {
        "w_cls": jax.random.normal(ks[0], (hidden, hidden), jnp.float32) * s,
        "b_cls": jax.random.normal(ks[1], (1, hidden), jnp.float32) * s,
        "w_e1": jax.random.normal(ks[2], (hidden, hidden), jnp.float32) * s,
        "b_e1": jax.random.normal(ks[3], (1, hidden), jnp.float32) * s,
        "w_e2": jax.random.normal(ks[4], (hidden, hidden), jnp.float32) * s,
        "b_e2": jax.random.normal(ks[5], (1, hidden), jnp.float32) * s,
        "w_d1": jax.random.normal(ks[6], (3 * hidden, hidden), jnp.float32) * s,
        "b_d1": jax.random.normal(ks[7], (1, hidden), jnp.float32) * s,
        "w_d2": jax.random.normal(ks[8], (hidden, hidden), jnp.float32) * s,
        "b_d2": jax.random.normal(ks[9], (1, hidden), jnp.float32) * s,
        "w_out": jax.random.normal(ks[10], (hidden, num_labels), jnp.float32) * s,
        "b_out": jax.random.normal(ks[11], (1, num_labels), jnp.float32) * s,
    }


if __name__ == "__main__":
    B, S, H, L = 2, 16, 128, 30

    key = jax.random.PRNGKey(0)
    k_x, k_p = jax.random.split(key)

    # Synthetic stand-in for plm(...).last_hidden_state.
    x = jax.random.normal(k_x, (B, S, H), jnp.float32)
    entity_idx = jnp.array([[2, 5, 8, 12],
                            [1, 4, 10, 14]], dtype=jnp.int32)
    params = init_params(k_p, H, L)

    # Fold once at "load time" (hoisted out of the forward path).
    wf, bf = fold_classifier_params(params)
    wf, bf = jax.block_until_ready(wf), jax.block_until_ready(bf)

    out = re_model_head(x, entity_idx, wf, bf, num_labels=L)
    out = jax.block_until_ready(out)

    ref = re_model_head_ref(x, entity_idx, params)
    assert out.shape == (B, L)
    # bf16 x streaming + folded affine tail change FP association slightly;
    # differences stay well below these tolerances.
    assert jnp.allclose(out, ref, atol=1e-3, rtol=1e-2), "mismatch vs reference"

    print("KERNEL_OK")
</pallas_src>

<mosaic_0001>
module attributes {stable_mosaic.version = 11 : i64} {
  func.func @_re_head_kernel(%arg0: i32, %arg1: memref<2x4xi32, #tpu.memory_space<smem>>, %arg2: memref<2x16x128xbf16, #tpu.memory_space<vmem>>, %arg3: memref<384x128xf32, #tpu.memory_space<vmem>>, %arg4: memref<1x128xf32, #tpu.memory_space<vmem>>, %arg5: memref<2x128xf32, #tpu.memory_space<vmem>>) attributes {dimension_semantics = [#tpu.dimension_semantics<parallel>], iteration_bounds = array<i64: 1>, scalar_prefetch = 1 : i64, scratch_operands = 0 : i64, tpu.core_type = #tpu.core_type<tc>, window_params = [{transform_indices = @transform_0, window_bounds = array<i64: 2, 16, 128>}, {pipeline_mode = #tpu.pipeline_mode<synchronous>, transform_indices = @transform_1, window_bounds = array<i64: 384, 128>}, {pipeline_mode = #tpu.pipeline_mode<synchronous>, transform_indices = @transform_2, window_bounds = array<i64: 1, 128>}, {transform_indices = @transform_3, window_bounds = array<i64: 2, 128>}]} {
    %c2_i32 = arith.constant 2 : i32
    %0 = arith.muli %arg0, %c2_i32 : i32
    %1 = tpu.iota {dimensions = array<i32: 0>} : vector<3x16xi32>
    %2 = tpu.iota {dimensions = array<i32: 1>} : vector<3x16xi32>
    %c0_i32 = arith.constant 0 : i32
    %3 = arith.addi %0, %c0_i32 : i32
    %4 = arith.index_cast %3 : i32 to index
    %c0 = arith.constant 0 : index
    %5 = memref.load %arg1[%4, %c0] : memref<2x4xi32, #tpu.memory_space<smem>>
    %c0_i32_0 = arith.constant 0 : i32
    %6 = arith.addi %0, %c0_i32_0 : i32
    %7 = arith.index_cast %6 : i32 to index
    %c1 = arith.constant 1 : index
    %8 = memref.load %arg1[%7, %c1] : memref<2x4xi32, #tpu.memory_space<smem>>
    %c0_i32_1 = arith.constant 0 : i32
    %9 = arith.addi %0, %c0_i32_1 : i32
    %10 = arith.index_cast %9 : i32 to index
    %c2 = arith.constant 2 : index
    %11 = memref.load %arg1[%10, %c2] : memref<2x4xi32, #tpu.memory_space<smem>>
    %c0_i32_2 = arith.constant 0 : i32
    %12 = arith.addi %0, %c0_i32_2 : i32
    %13 = arith.index_cast %12 : i32 to index
    %c3 = arith.constant 3 : index
    %14 = memref.load %arg1[%13, %c3] : memref<2x4xi32, #tpu.memory_space<smem>>
    %c1_i32 = arith.constant 1 : i32
    %15 = vector.broadcast %c1_i32 : i32 to vector<3x16xi32>
    %16 = arith.cmpi eq, %1, %15 : vector<3x16xi32>
    %c2_i32_3 = arith.constant 2 : i32
    %17 = vector.broadcast %c2_i32_3 : i32 to vector<3x16xi32>
    %18 = arith.cmpi eq, %1, %17 : vector<3x16xi32>
    %c0_i32_4 = arith.constant 0 : i32
    %19 = vector.broadcast %11 : i32 to vector<3x16xi32>
    %20 = vector.broadcast %c0_i32_4 : i32 to vector<3x16xi32>
    %21 = arith.select %18, %19, %20 : vector<3x16xi1>, vector<3x16xi32>
    %22 = vector.broadcast %5 : i32 to vector<3x16xi32>
    %23 = arith.select %16, %22, %21 : vector<3x16xi1>, vector<3x16xi32>
    %c1_i32_5 = arith.constant 1 : i32
    %24 = vector.broadcast %c1_i32_5 : i32 to vector<3x16xi32>
    %25 = arith.cmpi eq, %1, %24 : vector<3x16xi32>
    %c2_i32_6 = arith.constant 2 : i32
    %26 = vector.broadcast %c2_i32_6 : i32 to vector<3x16xi32>
    %27 = arith.cmpi eq, %1, %26 : vector<3x16xi32>
    %c1_i32_7 = arith.constant 1 : i32
    %28 = vector.broadcast %14 : i32 to vector<3x16xi32>
    %29 = vector.broadcast %c1_i32_7 : i32 to vector<3x16xi32>
    %30 = arith.select %27, %28, %29 : vector<3x16xi1>, vector<3x16xi32>
    %31 = vector.broadcast %8 : i32 to vector<3x16xi32>
    %32 = arith.select %25, %31, %30 : vector<3x16xi1>, vector<3x16xi32>
    %33 = arith.cmpi sge, %2, %23 : vector<3x16xi32>
    %34 = arith.cmpi slt, %2, %32 : vector<3x16xi32>
    %35 = arith.andi %33, %34 : vector<3x16xi1>
    %36 = arith.extui %35 : vector<3x16xi1> to vector<3x16xi32>
    %37 = arith.sitofp %36 : vector<3x16xi32> to vector<3x16xf32>
    %c1_i32_8 = arith.constant 1 : i32
    %38 = arith.addi %0, %c1_i32_8 : i32
    %39 = arith.index_cast %38 : i32 to index
    %c0_9 = arith.constant 0 : index
    %40 = memref.load %arg1[%39, %c0_9] : memref<2x4xi32, #tpu.memory_space<smem>>
    %c1_i32_10 = arith.constant 1 : i32
    %41 = arith.addi %0, %c1_i32_10 : i32
    %42 = arith.index_cast %41 : i32 to index
    %c1_11 = arith.constant 1 : index
    %43 = memref.load %arg1[%42, %c1_11] : memref<2x4xi32, #tpu.memory_space<smem>>
    %c1_i32_12 = arith.constant 1 : i32
    %44 = arith.addi %0, %c1_i32_12 : i32
    %45 = arith.index_cast %44 : i32 to index
    %c2_13 = arith.constant 2 : index
    %46 = memref.load %arg1[%45, %c2_13] : memref<2x4xi32, #tpu.memory_space<smem>>
    %c1_i32_14 = arith.constant 1 : i32
    %47 = arith.addi %0, %c1_i32_14 : i32
    %48 = arith.index_cast %47 : i32 to index
    %c3_15 = arith.constant 3 : index
    %49 = memref.load %arg1[%48, %c3_15] : memref<2x4xi32, #tpu.memory_space<smem>>
    %c1_i32_16 = arith.constant 1 : i32
    %50 = vector.broadcast %c1_i32_16 : i32 to vector<3x16xi32>
    %51 = arith.cmpi eq, %1, %50 : vector<3x16xi32>
    %c2_i32_17 = arith.constant 2 : i32
    %52 = vector.broadcast %c2_i32_17 : i32 to vector<3x16xi32>
    %53 = arith.cmpi eq, %1, %52 : vector<3x16xi32>
    %c0_i32_18 = arith.constant 0 : i32
    %54 = vector.broadcast %46 : i32 to vector<3x16xi32>
    %55 = vector.broadcast %c0_i32_18 : i32 to vector<3x16xi32>
    %56 = arith.select %53, %54, %55 : vector<3x16xi1>, vector<3x16xi32>
    %57 = vector.broadcast %40 : i32 to vector<3x16xi32>
    %58 = arith.select %51, %57, %56 : vector<3x16xi1>, vector<3x16xi32>
    %c1_i32_19 = arith.constant 1 : i32
    %59 = vector.broadcast %c1_i32_19 : i32 to vector<3x16xi32>
    %60 = arith.cmpi eq, %1, %59 : vector<3x16xi32>
    %c2_i32_20 = arith.constant 2 : i32
    %61 = vector.broadcast %c2_i32_20 : i32 to vector<3x16xi32>
    %62 = arith.cmpi eq, %1, %61 : vector<3x16xi32>
    %c1_i32_21 = arith.constant 1 : i32
    %63 = vector.broadcast %49 : i32 to vector<3x16xi32>
    %64 = vector.broadcast %c1_i32_21 : i32 to vector<3x16xi32>
    %65 = arith.select %62, %63, %64 : vector<3x16xi1>, vector<3x16xi32>
    %66 = vector.broadcast %43 : i32 to vector<3x16xi32>
    %67 = arith.select %60, %66, %65 : vector<3x16xi1>, vector<3x16xi32>
    %68 = arith.cmpi sge, %2, %58 : vector<3x16xi32>
    %69 = arith.cmpi slt, %2, %67 : vector<3x16xi32>
    %70 = arith.andi %68, %69 : vector<3x16xi1>
    %71 = arith.extui %70 : vector<3x16xi1> to vector<3x16xi32>
    %72 = arith.sitofp %71 : vector<3x16xi32> to vector<3x16xf32>
    %73 = vector.shape_cast %37 : vector<3x16xf32> to vector<1x3x16xf32>
    %74 = vector.shape_cast %72 : vector<3x16xf32> to vector<1x3x16xf32>
    %75 = tpu.concatenate %73, %74 in 0 : vector<1x3x16xf32>, vector<1x3x16xf32> -> vector<2x3x16xf32>
    %cst = arith.constant dense<0.000000e+00> : vector<2x3xf32>
    %76 = vector.multi_reduction <add>, %75, %cst [2] : vector<2x3x16xf32> to vector<2x3xf32>
    %77 = vector.shape_cast %76 : vector<2x3xf32> to vector<2x3x1xf32>
    %cst_22 = arith.constant 1.000000e+00 : f32
    %78 = vector.broadcast %cst_22 : f32 to vector<2x3x1xf32>
    %79 = arith.maximumf %77, %78 : vector<2x3x1xf32>
    %80 = tpu.reciprocal %79 {approx = true} : vector<2x3x1xf32> -> vector<2x3x1xf32>
    %81 = vector.broadcast %80 : vector<2x3x1xf32> to vector<2x3x16xf32>
    %82 = arith.mulf %75, %81 : vector<2x3x16xf32>
    %83 = arith.truncf %82 : vector<2x3x16xf32> to vector<2x3x16xbf16>
    %c0_23 = arith.constant 0 : index
    %c0_24 = arith.constant 0 : index
    %c0_25 = arith.constant 0 : index
    %84 = vector.load %arg2[%c0_23, %c0_24, %c0_25] : memref<2x16x128xbf16, #tpu.memory_space<vmem>>, vector<2x16x128xbf16>
    "tpu.trace_start"() <{level = 10 : i32, message = "bks,bsh->bkh"}> : () -> ()
    %cst_26 = arith.constant dense<0.000000e+00> : vector<2x3x128xf32>
    %85 = tpu.matmul %83, %84, %cst_26 {dimension_numbers = #tpu.dot_dimension_numbers<[2], [1], [1], [2], [0, 0, 0, 1, 1, 2], [0], [0]>} : vector<2x3x16xbf16>, vector<2x16x128xbf16>, vector<2x3x128xf32> -> vector<2x3x128xf32>
    "tpu.trace_stop"() : () -> ()
    %86 = math.tanh %85 : vector<2x3x128xf32>
    %87 = vector.extract_strided_slice %86 {offsets = [0, 0, 0], sizes = [2, 1, 128], strides = [1, 1, 1]} : vector<2x3x128xf32> to vector<2x1x128xf32>
    %88 = vector.shape_cast %87 : vector<2x1x128xf32> to vector<2x128xf32>
    %c0_27 = arith.constant 0 : index
    %c0_28 = arith.constant 0 : index
    %89 = vector.load %arg3[%c0_27, %c0_28] : memref<384x128xf32, #tpu.memory_space<vmem>>, vector<128x128xf32>
    %cst_29 = arith.constant dense<0.000000e+00> : vector<2x128xf32>
    %90 = tpu.matmul %88, %89, %cst_29 {dimension_numbers = #tpu.dot_dimension_numbers<[1], [0], [0], [1], [0, 0, 1, 1], [], []>} : vector<2x128xf32>, vector<128x128xf32>, vector<2x128xf32> -> vector<2x128xf32>
    %91 = vector.extract_strided_slice %86 {offsets = [0, 1, 0], sizes = [2, 1, 128], strides = [1, 1, 1]} : vector<2x3x128xf32> to vector<2x1x128xf32>
    %92 = vector.shape_cast %91 : vector<2x1x128xf32> to vector<2x128xf32>
    %c128 = arith.constant 128 : index
    %c0_30 = arith.constant 0 : index
    %93 = vector.load %arg3[%c128, %c0_30] : memref<384x128xf32, #tpu.memory_space<vmem>>, vector<128x128xf32>
    %cst_31 = arith.constant dense<0.000000e+00> : vector<2x128xf32>
    %94 = tpu.matmul %92, %93, %cst_31 {dimension_numbers = #tpu.dot_dimension_numbers<[1], [0], [0], [1], [0, 0, 1, 1], [], []>} : vector<2x128xf32>, vector<128x128xf32>, vector<2x128xf32> -> vector<2x128xf32>
    %95 = arith.addf %90, %94 : vector<2x128xf32>
    %96 = vector.extract_strided_slice %86 {offsets = [0, 2, 0], sizes = [2, 1, 128], strides = [1, 1, 1]} : vector<2x3x128xf32> to vector<2x1x128xf32>
    %97 = vector.shape_cast %96 : vector<2x1x128xf32> to vector<2x128xf32>
    %c256 = arith.constant 256 : index
    %c0_32 = arith.constant 0 : index
    %98 = vector.load %arg3[%c256, %c0_32] : memref<384x128xf32, #tpu.memory_space<vmem>>, vector<128x128xf32>
    %cst_33 = arith.constant dense<0.000000e+00> : vector<2x128xf32>
    %99 = tpu.matmul %97, %98, %cst_33 {dimension_numbers = #tpu.dot_dimension_numbers<[1], [0], [0], [1], [0, 0, 1, 1], [], []>} : vector<2x128xf32>, vector<128x128xf32>, vector<2x128xf32> -> vector<2x128xf32>
    %100 = arith.addf %95, %99 : vector<2x128xf32>
    %c0_34 = arith.constant 0 : index
    %c0_35 = arith.constant 0 : index
    %101 = vector.load %arg4[%c0_34, %c0_35] : memref<1x128xf32, #tpu.memory_space<vmem>>, vector<1x128xf32>
    %102 = vector.broadcast %101 : vector<1x128xf32> to vector<2x128xf32>
    %103 = arith.addf %100, %102 : vector<2x128xf32>
    %c0_36 = arith.constant 0 : index
    %c0_37 = arith.constant 0 : index
    %104 = vector.load %arg5[%c0_36, %c0_37] : memref<2x128xf32, #tpu.memory_space<vmem>>, vector<2x128xf32>
    tpu.vector_store %arg5[%c0_36, %c0_37], %103 {strides = array<i32>} : memref<2x128xf32, #tpu.memory_space<vmem>>, vector<2x128xf32>,
    return
  }
  func.func @transform_0(%arg0: i32, %arg1: memref<2x4xi32, #tpu.memory_space<smem>>) -> (i32, i32, i32) {
    %c0_i32 = arith.constant 0 : i32
    %c0_i32_0 = arith.constant 0 : i32
    %c0_i32_1 = arith.constant 0 : i32
    return %arg0, %c0_i32, %c0_i32_0 : i32, i32, i32
  }
  func.func @transform_1(%arg0: i32, %arg1: memref<2x4xi32, #tpu.memory_space<smem>>) -> (i32, i32) {
    %c0_i32 = arith.constant 0 : i32
    %c0_i32_0 = arith.constant 0 : i32
    %c0_i32_1 = arith.constant 0 : i32
    return %c0_i32, %c0_i32_0 : i32, i32
  }
  func.func @transform_2(%arg0: i32, %arg1: memref<2x4xi32, #tpu.memory_space<smem>>) -> (i32, i32) {
    %c0_i32 = arith.constant 0 : i32
    %c0_i32_0 = arith.constant 0 : i32
    %c0_i32_1 = arith.constant 0 : i32
    return %c0_i32, %c0_i32_0 : i32, i32
  }
  func.func @transform_3(%arg0: i32, %arg1: memref<2x4xi32, #tpu.memory_space<smem>>) -> (i32, i32) {
    %c0_i32 = arith.constant 0 : i32
    %c0_i32_0 = arith.constant 0 : i32
    return %arg0, %c0_i32 : i32, i32
  }
}

</mosaic_0001>

<bundles_post_ra>
// kernel: tpu_custom_call.1
= control target key start
LH: loop header
LB: loop body
LE: loop exit
PB: predicated region body
PF: predicated region fallthrough
CT: control target
= control target key end

     0   :  { %s450_s18 = smov [#allocation3]   ;;  %s509_s0 = inlined_call_operand.hbm [shape: s32[2,4], index: 0, kind: input, shape index: {}]   ;;  %s510_s1 = inlined_call_operand.hbm [shape: bf16[2,16,128], index: 1, kind: input, shape index: {}]   ;;  %s511_s2 = inlined_call_operand.hbm [shape: f32[384,128], index: 2, kind: input, shape index: {}]   ;;  %s512_s3 = inlined_call_operand.vmem [shape: f32[1,128], index: 3, kind: input, shape index: {}]   ;;  %s513_s4 = inlined_call_operand.hbm [shape: f32[2,128], index: 4, kind: output, shape index: {}]  }
   0x1   :  { %s10_s17 = sshll.u32 %s509_s0, 4  ;;  %s11_s17 = int_to_ptr.hbm [resolvable:$true] %s10_s17 }
   0x2   :  { %13 = dma.hbm_to_smem %s11_s17, 32, %s450_s18, [#allocation2] }
   0x3   :  { %442 = dma.done.wait [#allocation2], 32 }
   0x4   :  { %443 = vsyncadd [#allocation2], 4294967264 }
   0x5   :  { %16 = sfence }
   0x6   :  { %17 = vsyncpa [#allocation5], 0 }
   0x7   :  { %18 = vsyncpa [#allocation8], 0 }
   0x8   :  { %19 = vsyncpa [#allocation6], 0  ;;  %s24_s21 = sshll.u32 %s510_s1, 4  ;;  %s451_s22 = smov [#allocation4]   ;;  %s25_s21 = int_to_ptr.hbm [resolvable:$true] %s24_s21 }
   0x9   :  { %s26_s23 = sshll.u32 %s451_s22, 4  ;;  %s37_s0 = sshll.u32 %s511_s2, 4  ;;  %s27_s23 = int_to_ptr.vmem [resolvable:$true] %s26_s23  ;;  %s38_s0 = int_to_ptr.hbm [resolvable:$true] %s37_s0 }
   0xa   :  { %s452_s26 = smov 64   ;;  %s453_s27 = smov 4  }
   0xb   :  { %32 = dma.hbm_to_vmem [thread:$0]  %s25_s21, 256, %s27_s23, [#allocation5], %s452_s26, %s452_s26, %s453_s27  }
   0xc   :  { %s454_s28 = smov [#allocation7]   ;;  %s455_s30 = smov 128  }
   0xd   :  { %s39_s29 = sshll.u32 %s454_s28, 4  ;;  %s456_s5 = smov 8   ;;  %s40_s29 = int_to_ptr.vmem [resolvable:$true] %s39_s29 }
   0xe   :  { %45 = dma.hbm_to_vmem [thread:$0]  %s38_s0, 6144, %s40_s29, [#allocation8], %s455_s30, %s455_s30, %s456_s5  }
   0xf   :  { %444 = dma.done.wait [#allocation5], 256  }
  0x10   :  { %445 = vsyncadd [#allocation5], 4294967040 }
  0x11   :  { %446 = dma.done.wait [#allocation8], 6144  }
  0x12   :  { %447 = vsyncadd [#allocation8], 4294961152  ;;  %v58_v0 = vlaneseq  ;;  %s63_s1 = sld [smem:[#allocation3]]  ;;  %vm107_vm4 = vcmask 124928   ;;  %v457_v16 = vmov 0.0   ;;  %v338_v24 = vld [vmem:[#allocation4] sm:$0xff] }
  0x13   :  { %s319_s6 = sld [smem:[#allocation3 + $0x1]]  ;;  %143 = vmatpush.bf16.msra.mxu1 %v338_v24  ;;  %v339_v25 = vld [vmem:[#allocation4 + $0x8] sm:$0xff]  ;;  %v203_v27 = vld [vmem:[#allocation7 + $0xf0] sm:$0xff]  ;;  %v202_v32 = vld [vmem:[#allocation7 + $0xe8] sm:$0xff]  ;;  %vm132_vm9 = vcmask 130048   ;;  %vm208_vm10 = vcmask 1041409  }
  0x14   :  { %v59_v1 = vshrl.u32 %v58_v0, 7  ;;  %s320_s7 = sld [smem:[#allocation3 + $0x2]]  ;;  %v61_v2 = vand.u32 127, %v58_v0  ;;  %v204_v26 = vld [vmem:[#allocation7 + $0xf8] sm:$0xff]  ;;  %v187_v30 = vld [vmem:[#allocation7 + $0x70] sm:$0xff]  ;;  %v201_v43 = vld [vmem:[#allocation7 + $0xe0] sm:$0xff] }
  0x15   :  { %s321_s2 = sld [smem:[#allocation3 + $0x3]]  ;;  %v188_v28 = vld [vmem:[#allocation7 + $0x78] sm:$0xff]  ;;  %211 = vmatpush.msra.mxu2 %v204_v26  ;;  %v268_v33 = vld [vmem:[#allocation7 + $0x170] sm:$0xff]  ;;  %v186_v44 = vld [vmem:[#allocation7 + $0x68] sm:$0xff]  ;;  %s458_s14 = smov [#allocation9]  }
  0x16   :  { %s323_s8 = sld [smem:[#allocation3 + $0x80]]  ;;  %vm71_vm0 = vcmp.eq.s32.totalorder %v59_v1, 2  ;;  %vm70_vm1 = vcmp.eq.s32.totalorder %v59_v1, 1  ;;  %234 = vmatpush.msra.mxu3 %v188_v28  ;;  %v269_v29 = vld [vmem:[#allocation7 + $0x178] sm:$0xff]  ;;  %v267_v45 = vld [vmem:[#allocation7 + $0x168] sm:$0xff]  ;;  %v185_v47 = vld [vmem:[#allocation7 + $0x60] sm:$0xff] }
  0x17   :  { %s324_s9 = sld [smem:[#allocation3 + $0x81]]  ;;  %165 = vmatpush.bf16.msrb.mxu1 %v339_v25  ;;  %274 = vmatpush.msra.mxu0 %v269_v29  ;;  %v200_v46 = vld [vmem:[#allocation7 + $0xd8] sm:$0xff]  ;;  %v266_v48 = vld [vmem:[#allocation7 + $0x160] sm:$0xff]  ;;  %v199_v49 = vld [vmem:[#allocation7 + $0xd0] sm:$0xff]  ;;  %s306_s15 = sshll.u32 %s458_s14, 4  ;;  %s307_s15 = int_to_ptr.vmem [resolvable:$true] %s306_s15 }
  0x18   :  { %s325_s10 = sld [smem:[#allocation3 + $0x82]]  ;;  %v74_v3 = vstv %s63_s1  ;;  %212 = vmatpush.msra.mxu2 %v203_v27  ;;  %235 = vmatpush.msra.mxu3 %v187_v30  ;;  %v184_v50 = vld [vmem:[#allocation7 + $0x58] sm:$0xff]  ;;  %v198_v52 = vld [vmem:[#allocation7 + $0xc8] sm:$0xff]  ;;  %v183_v53 = vld [vmem:[#allocation7 + $0x50] sm:$0xff]  ;;  %s308_s18 = sshll.u32 %s513_s4, 4  ;;  %s309_s18 = int_to_ptr.hbm [resolvable:$true] %s308_s18 }
  0x19   :  { %s326_s11 = sld [smem:[#allocation3 + $0x83]]  ;;  %v78_v5 = vstv %s319_s6  ;;  %275 = vmatpush.msra.mxu0 %v268_v33  ;;  %v265_v51 = vld [vmem:[#allocation7 + $0x158] sm:$0xff]  ;;  %v264_v54 = vld [vmem:[#allocation7 + $0x150] sm:$0xff]  ;;  %v197_v55 = vld [vmem:[#allocation7 + $0xc0] sm:$0xff] }
  0x1a   :  { %v72_v4 = vstv %s320_s7  ;;  %213 = vmatpush.msra.mxu2 %v202_v32  ;;  %236 = vmatpush.msra.mxu3 %v186_v44  ;;  %v182_v56 = vld [vmem:[#allocation7 + $0x48] sm:$0xff]  ;;  %v196_v58 = vld [vmem:[#allocation7 + $0xb8] sm:$0xff]  ;;  %v181_v59 = vld [vmem:[#allocation7 + $0x40] sm:$0xff] }
  0x1b   :  { %v73_v6 = vsel %vm71_vm0, %v72_v4, 0  ;;  %v76_v7 = vstv %s321_s2  ;;  %276 = vmatpush.msra.mxu0 %v267_v45  ;;  %v263_v57 = vld [vmem:[#allocation7 + $0x148] sm:$0xff]  ;;  %v262_v60 = vld [vmem:[#allocation7 + $0x140] sm:$0xff]  ;;  %v195_v61 = vld [vmem:[#allocation7 + $0xb0] sm:$0xff] }
  0x1c   :  { %v75_v8 = vsel %vm70_vm1, %v74_v3, %v73_v6  ;;  %v77_v9 = vsel %vm71_vm0, %v76_v7, 1  ;;  %v96_v11 = vstv %s323_s8  ;;  %214 = vmatpush.msra.mxu2 %v201_v43  ;;  %237 = vmatpush.msra.mxu3 %v185_v47  ;;  %v180_v62 = vld [vmem:[#allocation7 + $0x38] sm:$0xff]  ;;  %v194_v0 = vld [vmem:[#allocation7 + $0xa8] sm:$0xff]  ;;  %v179_v1 = vld [vmem:[#allocation7 + $0x30] sm:$0xff] }
  0x1d   :  { %v79_v10 = vsel %vm70_vm1, %v78_v5, %v77_v9  ;;  %vm80_vm2 = vcmp.ge.s32.totalorder %v61_v2, %v75_v8  ;;  %v100_v13 = vstv %s324_s9  ;;  %277 = vmatpush.msra.mxu0 %v266_v48  ;;  %v261_v63 = vld [vmem:[#allocation7 + $0x138] sm:$0xff]  ;;  %v193_v3 = vld [vmem:[#allocation7 + $0xa0] sm:$0xff]  ;;  %v178_v4 = vld [vmem:[#allocation7 + $0x28] sm:$0xff] }
  0x1e   :  { %vm81_vm3 = vcmp.lt.s32.totalorder %v61_v2, %v79_v10  ;;  %v94_v12 = vstv %s325_s10  ;;  %215 = vmatpush.msra.mxu2 %v200_v46  ;;  %238 = vmatpush.msra.mxu3 %v184_v50  ;;  %v259_v5 = vld [vmem:[#allocation7 + $0x128] sm:$0xff]  ;;  %v192_v6 = vld [vmem:[#allocation7 + $0x98] sm:$0xff]  ;;  %v177_v7 = vld [vmem:[#allocation7 + $0x20] sm:$0xff] }
  0x1f   :  { %vm82_vm5 = vmand %vm80_vm2, %vm81_vm3  ;;  %v95_v14 = vsel %vm71_vm0, %v94_v12, 0  ;;  %v98_v15 = vstv %s326_s11  ;;  %278 = vmatpush.msra.mxu0 %v265_v51  ;;  %v258_v8 = vld [vmem:[#allocation7 + $0x120] sm:$0xff]  ;;  %v191_v9 = vld [vmem:[#allocation7 + $0x90] sm:$0xff] }
  0x20   :  { %v322_v17 = vsel %vm82_vm5, 1.0, %v457_v16  ;;  %v97_v18 = vsel %vm70_vm1, %v96_v11, %v95_v14  ;;  %v99_v19 = vsel %vm71_vm0, %v98_v15, 1  ;;  %216 = vmatpush.msra.mxu2 %v199_v49  ;;  %239 = vmatpush.msra.mxu3 %v183_v53  ;;  %v176_v10 = vld [vmem:[#allocation7 + $0x18] sm:$0xff]  ;;  %v190_v12 = vld [vmem:[#allocation7 + $0x88] sm:$0xff]  ;;  %v256_v14 = vld [vmem:[#allocation7 + $0x110] sm:$0xff] }
  0x21   :  { %v108_v20 = vsel %vm107_vm4, %v322_v17, 0.0  ;;  %v101_v21 = vsel %vm70_vm1, %v100_v13, %v99_v19  ;;  %vm102_vm6 = vcmp.ge.s32.totalorder %v61_v2, %v97_v18  ;;  %279 = vmatpush.msra.mxu0 %v264_v54  ;;  %v257_v11 = vld [vmem:[#allocation7 + $0x118] sm:$0xff]  ;;  %v175_v13 = vld [vmem:[#allocation7 + $0x10] sm:$0xff]  ;;  %v189_v15 = vld [vmem:[#allocation7 + $0x80] sm:$0xff] }
  0x22   :  { %109 = vadd.xlane.f32.xlu0 %v108_v20  ;;  %vm103_vm7 = vcmp.lt.s32.totalorder %v61_v2, %v101_v21  ;;  %217 = vmatpush.msra.mxu2 %v198_v52  ;;  %v260_v2 = vld [vmem:[#allocation7 + $0x130] sm:$0xff]  ;;  %v173_v18 = vld [vmem:[#allocation7] sm:$0xff] }
  0x23   :  { %vm104_vm8 = vmand %vm102_vm6, %vm103_vm7  ;;  %240 = vmatpush.msra.mxu3 %v182_v56  ;;  %280 = vmatpush.msra.mxu0 %v263_v57  ;;  %v254_v19 = vld [vmem:[#allocation7 + $0x100] sm:$0xff] }
  0x24   :  { %v327_v22 = vsel %vm104_vm8, 1.0, %v457_v16  ;;  %218 = vmatpush.msra.mxu2 %v197_v55  ;;  %v174_v16 = vld [vmem:[#allocation7 + $0x8] sm:$0xff] }
  0x25   :  { %v111_v23 = vsel %vm107_vm4, %v327_v22, 0.0  ;;  %241 = vmatpush.msra.mxu3 %v181_v59  ;;  %281 = vmatpush.msra.mxu0 %v262_v60 }
  0x26   :  { %219 = vmatpush.msra.mxu2 %v196_v58 }
  0x27   :  { %242 = vmatpush.msra.mxu3 %v180_v62  ;;  %282 = vmatpush.msra.mxu0 %v261_v63 }
  0x28   :  { %220 = vmatpush.msra.mxu2 %v195_v61 }
  0x29   :  { %243 = vmatpush.msra.mxu3 %v179_v1  ;;  %283 = vmatpush.msra.mxu0 %v260_v2 }
  0x2a   :  { %112 = vadd.xlane.f32.xlu0 %v111_v23  ;;  %221 = vmatpush.msra.mxu2 %v194_v0 }
  0x2b   :  { %244 = vmatpush.msra.mxu3 %v178_v4  ;;  %284 = vmatpush.msra.mxu0 %v259_v5 }
  0x2c   :  { %222 = vmatpush.msra.mxu2 %v193_v3 }
  0x2d   :  { %245 = vmatpush.msra.mxu3 %v177_v7  ;;  %285 = vmatpush.msra.mxu0 %v258_v8 }
  0x2e   :  { %223 = vmatpush.msra.mxu2 %v192_v6 }
  0x2f   :  { %246 = vmatpush.msra.mxu3 %v176_v10  ;;  %286 = vmatpush.msra.mxu0 %v257_v11 }
  0x30   :  { %224 = vmatpush.msra.mxu2 %v191_v9 }
  0x31   :  { %247 = vmatpush.msra.mxu3 %v175_v13  ;;  %287 = vmatpush.msra.mxu0 %v256_v14 }
  0x32   :  { %225 = vmatpush.msra.mxu2 %v190_v12 }
  0x33   :  { %248 = vmatpush.msra.mxu3 %v174_v16 }
  0x34   :  { %226 = vmatpush.msra.mxu2 %v189_v15 }
  0x35   :  { %249 = vmatpush.msra.mxu3 %v173_v18 }
  0x95   :  { %v110_v31 = vpop.xlane.xlu0 %109 }
  0x96   :  { %v114_v34 = vmax.f32 %v110_v31, 1.0 }
  0x98   :  { %350 = vrcp.f32 %v114_v34 }
  0x9d   :  { %v113_v35 = vpop.xlane.xlu0 %112 }
  0x9e   :  { %v351_v36 = vpop.eup %350  ;;  %v115_v37 = vmax.f32 %v113_v35, 1.0 }
  0x9f   :  { %v118_v38 = vmul.f32 %v351_v36, %v322_v17  ;;  %v255_v17 = vld [vmem:[#allocation7 + $0x108] sm:$0xff]  ;;  %v349_v36 = vld [vmem:[%s512_s3] ss:$0 sm:$0xff] }
  0xa0   :  { %352 = vrcp.f32 %v115_v37  ;;  %288 = vmatpush.msra.mxu0 %v255_v17 }
  0xa1   :  { %v120_v39 = vpack.c.bf16 %v118_v38, %v118_v38 }
  0xa2   :  { %289 = vmatpush.msra.mxu0 %v254_v19 }
  0xa3   :  { %332 = vmatmul.msk.bf16.vlgmr.msra.gmra.mxu1 %vm132_vm9, %v120_v39 }
  0xa6   :  { %v353_v40 = vpop.eup %352 }
  0xa7   :  { %v119_v41 = vmul.f32 %v353_v40, %v327_v22 }
  0xa9   :  { %v121_v42 = vpack.c.bf16 %v119_v41, %v119_v41 }
  0xb3   :  { %337 = vmatmul.msk.bf16.vlgmr.msrb.gmra.mxu1 %vm132_vm9, %v121_v42 }
 0x120   :  { %v145_v20 = vpop.f32.mrf.mxu1 }
 0x121   :  { %354 = vtanh.f32 %v145_v20 }
 0x127   :  { %v355_v23 = vpop.eup %354 }
 0x128   :  { %v147_v21 = vpop.f32.mrf.mxu1  ;;  %v207_v24 = vrot.slane %v355_v23, 1  ;;  %v270_v29 = vrot.slane %v355_v23, 2 }
 0x130   :  { %v167_v22 = vpop.f32.mrf.mxu1 }
 0x131   :  { %356 = vtanh.f32 %v167_v22 }
 0x137   :  { %v357_v25 = vpop.eup %356 }
 0x138   :  { %v169_v26 = vpop.f32.mrf.mxu1  ;;  %v209_v27 = vsel %vm208_vm10, %v357_v25, %v207_v24  ;;  %v231_v28 = vrot.slane %v357_v25, 7  ;;  %v271_v30 = vrot.slane %v357_v25, 1 }
 0x139   :  { %227 = vmatmul.f32.vlgmr.msra.gmra.mxu2 %v209_v27 }
 0x13a   :  { %v232_v31 = vsel %vm208_vm10, %v231_v28, %v355_v23  ;;  %v272_v32 = vsel %vm208_vm10, %v271_v30, %v270_v29 }
 0x13b   :  { %250 = vmatmul.f32.vlgmr.msra.gmra.mxu3 %v232_v31  ;;  %290 = vmatmul.f32.vlgmr.msra.gmra.mxu0 %v272_v32 }
 0x1b8   :  { %v291_v37 = vpop.f32.mrf.mxu0 }
 0x1bc   :  { %v228_v33 = vpop.f32.mrf.mxu2 }
 0x1be   :  { %v251_v34 = vpop.f32.mrf.mxu3 }
 0x1bf   :  { %v252_v35 = vadd.f32 %v251_v34, %v228_v33 }
 0x1c1   :  { %v294_v38 = vadd.f32 %v291_v37, %v252_v35 }
 0x1c3   :  { %v299_v39 = vadd.f32 %v349_v36, %v294_v38 }
 0x1c5   :  { %300 = vst [vmem:[#allocation9] sm:$0x3] %v299_v39 }
 0x1c6   :  { %311 = dma.vmem_to_hbm [thread:$0]  %s307_s15, 32, %s309_s18, [#allocation6]  }
 0x1c7   :  { %448 = dma.done.wait [#allocation6], 32  }
 0x1c8   :  { %449 = vsyncadd [#allocation6], 4294967264 }
 0x1c9   :  { %316 = vsyncpa [#allocation5], 1 }
 0x1ca   :  { %317 = vsyncpa [#allocation8], 1 }
 0x1cb   :  { %318 = vsyncpa [#allocation6], 1 }

</bundles_post_ra>
